<compile_context>
chip_gen: v7x
topology: tpu7x:2x2x1
jax: 0.10.0
libtpu: 0.0.40
codegen_flags: <defaults>
</compile_context>

<pallas_src>
import math
import functools
import numpy as np

import jax
import jax.numpy as jnp
from jax import lax
from jax.experimental import pallas as pl
from jax.experimental.pallas import tpu as pltpu


LN_EPS = 1e-12
MASK_VALUE = -10000.0
NEG_BIG = -1e30          # finite "minus infinity" (avoids exp(-inf + inf) NaNs)
VMEM_LIMIT = 32 * 1024 * 1024   # safe on v5e / v6e / v7x


def _gelu_exact(x):
    # BERT "gelu" (erf-based), computed in f32 on the VPU/EUP.
    return 0.5 * x * (1.0 + lax.erf(x * (1.0 / math.sqrt(2.0))))


def _pick_tile(dim, target, granule):
    """Largest tile <= target that divides `dim` and is a multiple of
    `granule`; falls back to the full dimension (always a legal block)."""
    if dim <= target:
        return dim
    t = (target // granule) * granule
    while t > 0 and dim % t != 0:
        t -= granule
    return t if t > 0 else dim


def _cparams(dims):
    return pltpu.CompilerParams(dimension_semantics=dims,
                                vmem_limit_bytes=VMEM_LIMIT)


# --------------------------------------------------------------------------
# Tiled matmul + bias (+ optional GELU):  y = act(x @ W + b)
# grid = (M/tm, N/tn, K/tk), f32 accumulator scratch, bf16 MXU inputs.
# --------------------------------------------------------------------------

def _matmul_bias_kernel(x_ref, w_ref, b_ref, o_ref, acc_ref, *, activation):
    k = pl.program_id(2)

    @pl.when(k == 0)
    def _():
        acc_ref[...] = jnp.zeros_like(acc_ref)

    acc_ref[...] += jnp.dot(x_ref[...].astype(jnp.bfloat16),
                            w_ref[...],
                            preferred_element_type=jnp.float32)

    @pl.when(k == pl.num_programs(2) - 1)
    def _():
        y = acc_ref[...] + b_ref[...]
        if activation == "gelu":
            y = _gelu_exact(y)
        o_ref[...] = y.astype(o_ref.dtype)


def dense(x, w, b, activation=None,
          tm_target=256, tn_target=256, tk_target=512):
    M, K = x.shape
    K2, N = w.shape
    assert K == K2
    tm = _pick_tile(M, tm_target, 8)
    tn = _pick_tile(N, tn_target, 128)
    tk = _pick_tile(K, tk_target, 128)
    grid = (M // tm, N // tn, K // tk)
    kernel = functools.partial(_matmul_bias_kernel, activation=activation)
    return pl.pallas_call(
        kernel,
        out_shape=jax.ShapeDtypeStruct((M, N), jnp.float32),
        grid_spec=pltpu.PrefetchScalarGridSpec(
            num_scalar_prefetch=0,
            grid=grid,
            in_specs=[
                pl.BlockSpec((tm, tk), lambda i, j, k: (i, k)),
                pl.BlockSpec((tk, tn), lambda i, j, k: (k, j)),
                pl.BlockSpec((1, tn), lambda i, j, k: (0, j)),
            ],
            out_specs=pl.BlockSpec((tm, tn), lambda i, j, k: (i, j)),
            scratch_shapes=[pltpu.VMEM((tm, tn), jnp.float32)],
        ),
        compiler_params=_cparams(("parallel", "parallel", "arbitrary")),
    )(x, w, b.reshape(1, -1))


# --------------------------------------------------------------------------
# Tiled matmul against an untransposed [V, D] weight:  y = x @ W^T + b
# (MLM decoder tied to word embeddings; vocab axis tiled, no HBM transpose).
# --------------------------------------------------------------------------

def _matmul_nt_bias_kernel(x_ref, w_ref, b_ref, o_ref, acc_ref):
    k = pl.program_id(2)

    @pl.when(k == 0)
    def _():
        acc_ref[...] = jnp.zeros_like(acc_ref)

    acc_ref[...] += lax.dot_general(
        x_ref[...].astype(jnp.bfloat16), w_ref[...],
        (((1,), (1,)), ((), ())),
        preferred_element_type=jnp.float32)

    @pl.when(k == pl.num_programs(2) - 1)
    def _():
        o_ref[...] = (acc_ref[...] + b_ref[...]).astype(o_ref.dtype)


def dense_nt(x, w_vd, b, tm_target=256, tv_target=2048, tk_target=512):
    M, K = x.shape
    V, K2 = w_vd.shape
    assert K == K2
    tm = _pick_tile(M, tm_target, 8)
    tv = _pick_tile(V, tv_target, 128)
    tk = _pick_tile(K, tk_target, 128)
    grid = (M // tm, V // tv, K // tk)
    return pl.pallas_call(
        _matmul_nt_bias_kernel,
        out_shape=jax.ShapeDtypeStruct((M, V), jnp.float32),
        grid_spec=pltpu.PrefetchScalarGridSpec(
            num_scalar_prefetch=0,
            grid=grid,
            in_specs=[
                pl.BlockSpec((tm, tk), lambda i, j, k: (i, k)),
                pl.BlockSpec((tv, tk), lambda i, j, k: (j, k)),
                pl.BlockSpec((1, tv), lambda i, j, k: (0, j)),
            ],
            out_specs=pl.BlockSpec((tm, tv), lambda i, j, k: (i, j)),
            scratch_shapes=[pltpu.VMEM((tm, tv), jnp.float32)],
        ),
        compiler_params=_cparams(("parallel", "parallel", "arbitrary")),
    )(x, w_vd, b.reshape(1, -1))


# --------------------------------------------------------------------------
# Tiled matmul + bias (+ GELU) (+ residual) + LayerNorm, fused epilogue.
# Requires the full output feature dim in one tile (needed for LN stats).
# grid = (M/tm, K/tk).
# --------------------------------------------------------------------------

def _matmul_ln_kernel(*refs, activation, use_residual, eps):
    if use_residual:
        x_ref, w_ref, b_ref, r_ref, g_ref, beta_ref, o_ref, acc_ref = refs
    else:
        x_ref, w_ref, b_ref, g_ref, beta_ref, o_ref, acc_ref = refs
        r_ref = None
    k = pl.program_id(1)

    @pl.when(k == 0)
    def _():
        acc_ref[...] = jnp.zeros_like(acc_ref)

    acc_ref[...] += jnp.dot(x_ref[...].astype(jnp.bfloat16),
                            w_ref[...],
                            preferred_element_type=jnp.float32)

    @pl.when(k == pl.num_programs(1) - 1)
    def _():
        y = acc_ref[...] + b_ref[...]
        if activation == "gelu":
            y = _gelu_exact(y)
        if use_residual:
            y = y + r_ref[...]
        mean = jnp.mean(y, axis=-1, keepdims=True)
        var = jnp.mean((y - mean) ** 2, axis=-1, keepdims=True)
        yn = (y - mean) * lax.rsqrt(var + eps)
        o_ref[...] = (yn * g_ref[...] + beta_ref[...]).astype(o_ref.dtype)


def dense_ln(x, w, b, gamma, beta, *, residual=None, activation=None,
             eps=LN_EPS, tm_target=256, tk_target=512):
    M, K = x.shape
    K2, N = w.shape
    assert K == K2
    tm = _pick_tile(M, tm_target, 8)
    tk = _pick_tile(K, tk_target, 128)
    grid = (M // tm, K // tk)
    use_res = residual is not None

    in_specs = [
        pl.BlockSpec((tm, tk), lambda i, k: (i, k)),
        pl.BlockSpec((tk, N), lambda i, k: (k, 0)),
        pl.BlockSpec((1, N), lambda i, k: (0, 0)),
    ]
    args = [x, w, b.reshape(1, -1)]
    if use_res:
        in_specs.append(pl.BlockSpec((tm, N), lambda i, k: (i, 0)))
        args.append(residual)
    in_specs += [pl.BlockSpec((1, N), lambda i, k: (0, 0)),
                 pl.BlockSpec((1, N), lambda i, k: (0, 0))]
    args += [gamma.reshape(1, -1), beta.reshape(1, -1)]

    kernel = functools.partial(_matmul_ln_kernel, activation=activation,
                               use_residual=use_res, eps=eps)
    return pl.pallas_call(
        kernel,
        out_shape=jax.ShapeDtypeStruct((M, N), jnp.float32),
        grid_spec=pltpu.PrefetchScalarGridSpec(
            num_scalar_prefetch=0,
            grid=grid,
            in_specs=in_specs,
            out_specs=pl.BlockSpec((tm, N), lambda i, k: (i, 0)),
            scratch_shapes=[pltpu.VMEM((tm, N), jnp.float32)],
        ),
        compiler_params=_cparams(("parallel", "arbitrary")),
    )(*args)


# --------------------------------------------------------------------------
# Standalone LayerNorm (embedding LN), tiled over rows.
# --------------------------------------------------------------------------

def _layernorm_kernel(x_ref, g_ref, b_ref, o_ref, *, eps):
    x = x_ref[...].astype(jnp.float32)
    mean = jnp.mean(x, axis=-1, keepdims=True)
    var = jnp.mean((x - mean) ** 2, axis=-1, keepdims=True)
    y = (x - mean) * lax.rsqrt(var + eps)
    o_ref[...] = (y * g_ref[...] + b_ref[...]).astype(o_ref.dtype)


def layernorm(x, g, b, eps=LN_EPS, tm_target=512):
    M, D = x.shape
    tm = _pick_tile(M, tm_target, 8)
    return pl.pallas_call(
        functools.partial(_layernorm_kernel, eps=eps),
        out_shape=jax.ShapeDtypeStruct((M, D), jnp.float32),
        grid_spec=pltpu.PrefetchScalarGridSpec(
            num_scalar_prefetch=0,
            grid=(M // tm,),
            in_specs=[pl.BlockSpec((tm, D), lambda i: (i, 0)),
                      pl.BlockSpec((1, D), lambda i: (0, 0)),
                      pl.BlockSpec((1, D), lambda i: (0, 0))],
            out_specs=pl.BlockSpec((tm, D), lambda i: (i, 0)),
        ),
        compiler_params=_cparams(("parallel",)),
    )(x, g.reshape(1, -1), b.reshape(1, -1))


# --------------------------------------------------------------------------
# Flash-style multi-head attention with online softmax.
# q, k, v : [B*S, D] (heads sliced inside the kernel — no XLA transposes).
# mask    : [B, 1, S] additive key mask (0 / -10000), broadcast over heads.
# grid = (B, q_tiles, kv_tiles); scratch m/l per head + f32 accumulator.
# --------------------------------------------------------------------------

def _flash_attn_kernel(q_ref, k_ref, v_ref, mask_ref, o_ref,
                       m_sc, l_sc, acc_sc, *, num_heads, scale):
    ki = pl.program_id(2)

    @pl.when(ki == 0)
    def _():
        m_sc[...] = jnp.full(m_sc.shape, NEG_BIG, dtype=m_sc.dtype)
        l_sc[...] = jnp.zeros_like(l_sc)
        acc_sc[...] = jnp.zeros_like(acc_sc)

    q = q_ref[...].astype(jnp.bfloat16)
    k = k_ref[...].astype(jnp.bfloat16)
    v = v_ref[...].astype(jnp.bfloat16)
    add_mask = mask_ref[0]                       # (1, tkv), f32
    D = q.shape[-1]
    dh = D // num_heads

    for h in range(num_heads):                   # static unroll over heads
        sl = slice(h * dh, (h + 1) * dh)
        s = lax.dot_general(q[:, sl], k[:, sl], (((1,), (1,)), ((), ())),
                            preferred_element_type=jnp.float32)
        s = s * scale + add_mask                 # mask added in f32 after MXU
        m_prev = m_sc[:, h:h + 1]
        m_new = jnp.maximum(m_prev, jnp.max(s, axis=-1, keepdims=True))
        alpha = jnp.exp(m_prev - m_new)
        p = jnp.exp(s - m_new)
        l_sc[:, h:h + 1] = alpha * l_sc[:, h:h + 1] + jnp.sum(
            p, axis=-1, keepdims=True)
        acc_sc[:, sl] = alpha * acc_sc[:, sl] + jnp.dot(
            p.astype(jnp.bfloat16), v[:, sl],
            preferred_element_type=jnp.float32)
        m_sc[:, h:h + 1] = m_new

    @pl.when(ki == pl.num_programs(2) - 1)
    def _():
        for h in range(num_heads):
            sl = slice(h * dh, (h + 1) * dh)
            inv_l = pl.reciprocal(l_sc[:, h:h + 1], approx=True)
            o_ref[:, sl] = (acc_sc[:, sl] * inv_l).astype(o_ref.dtype)


def flash_attention(q, k, v, add_mask, *, batch, seq, num_heads,
                    tq_target=256, tkv_target=512):
    M, D = q.shape                               # M = batch * seq
    tq = _pick_tile(seq, tq_target, 8)
    tkv = _pick_tile(seq, tkv_target, 128)
    nq = seq // tq
    nk = seq // tkv
    scale = 1.0 / math.sqrt(D // num_heads)
    kernel = functools.partial(_flash_attn_kernel,
                               num_heads=num_heads, scale=scale)
    return pl.pallas_call(
        kernel,
        out_shape=jax.ShapeDtypeStruct((M, D), jnp.float32),
        grid_spec=pltpu.PrefetchScalarGridSpec(
            num_scalar_prefetch=0,
            grid=(batch, nq, nk),
            in_specs=[
                pl.BlockSpec((tq, D), lambda b, qi, ki: (b * nq + qi, 0)),
                pl.BlockSpec((tkv, D), lambda b, qi, ki: (b * nk + ki, 0)),
                pl.BlockSpec((tkv, D), lambda b, qi, ki: (b * nk + ki, 0)),
                pl.BlockSpec((1, 1, tkv), lambda b, qi, ki: (b, 0, ki)),
            ],
            out_specs=pl.BlockSpec((tq, D), lambda b, qi, ki: (b * nq + qi, 0)),
            scratch_shapes=[
                pltpu.VMEM((tq, num_heads), jnp.float32),   # running max m
                pltpu.VMEM((tq, num_heads), jnp.float32),   # running sum l
                pltpu.VMEM((tq, D), jnp.float32),           # accumulator
            ],
        ),
        compiler_params=_cparams(("parallel", "parallel", "arbitrary")),
    )(q, k, v, add_mask)


# --------------------------------------------------------------------------
# log_softmax over vocab, tiled over rows (full vocab row on the lane axis).
# --------------------------------------------------------------------------

def _log_softmax_kernel(x_ref, o_ref):
    x = x_ref[...].astype(jnp.float32)
    m = jnp.max(x, axis=-1, keepdims=True)
    s = x - m
    lse = jnp.log(jnp.sum(jnp.exp(s), axis=-1, keepdims=True))
    o_ref[...] = (s - lse).astype(o_ref.dtype)


def log_softmax(x, tm_target=256):
    M, V = x.shape
    tm = _pick_tile(M, tm_target, 8)
    return pl.pallas_call(
        _log_softmax_kernel,
        out_shape=jax.ShapeDtypeStruct((M, V), jnp.float32),
        grid_spec=pltpu.PrefetchScalarGridSpec(
            num_scalar_prefetch=0,
            grid=(M // tm,),
            in_specs=[pl.BlockSpec((tm, V), lambda i: (i, 0))],
            out_specs=pl.BlockSpec((tm, V), lambda i: (i, 0)),
        ),
        compiler_params=_cparams(("parallel",)),
    )(x)


# ------------------------------- Parameters --------------------------------

def init_params(key, vocab, dim, inter, n_layers, n_types, max_pos):
    keys = jax.random.split(key, 8 + 8 * n_layers)
    kit = iter(keys)

    def nrm(shape, dtype=jnp.float32):
        return (jax.random.normal(next(kit), shape, jnp.float32) * 0.02
                ).astype(dtype)

    p = {
        # matmul weights stored in bf16 (MXU inputs, half the HBM bytes);
        # biases / LN params / embedding sums stay f32.
        "word_emb": nrm((vocab, dim), jnp.bfloat16),
        "pos_emb": nrm((max_pos, dim)),
        "type_emb": nrm((n_types, dim)),
        "emb_ln_g": jnp.ones((dim,), jnp.float32),
        "emb_ln_b": jnp.zeros((dim,), jnp.float32),
        "mlm_w": nrm((dim, dim), jnp.bfloat16),
        "mlm_b": jnp.zeros((dim,), jnp.float32),
        "mlm_ln_g": jnp.ones((dim,), jnp.float32),
        "mlm_ln_b": jnp.zeros((dim,), jnp.float32),
        "decoder_bias": jnp.zeros((vocab,), jnp.float32),
        "layers": [],
    }
    for _ in range(n_layers):
        p["layers"].append(dict(
            # fused Q|K|V projection weight: one [D, 3D] matmul per layer
            w_qkv=nrm((dim, 3 * dim), jnp.bfloat16),
            b_qkv=jnp.zeros((3 * dim,), jnp.float32),
            wo=nrm((dim, dim), jnp.bfloat16),
            bo=jnp.zeros((dim,), jnp.float32),
            ln1_g=jnp.ones((dim,), jnp.float32),
            ln1_b=jnp.zeros((dim,), jnp.float32),
            wi=nrm((dim, inter), jnp.bfloat16),
            bi=jnp.zeros((inter,), jnp.float32),
            wo2=nrm((inter, dim), jnp.bfloat16),
            bo2=jnp.zeros((dim,), jnp.float32),
            ln2_g=jnp.ones((dim,), jnp.float32),
            ln2_b=jnp.zeros((dim,), jnp.float32),
        ))
    return p


# ------------------------------ Forward pass --------------------------------

def bert_encoder(params, texts, pads, langs_tensor, num_heads):
    B, S = texts.shape
    D = params["word_emb"].shape[1]

    # Embeddings (gathers are glue); LayerNorm in Pallas.
    emb = (params["word_emb"][texts].astype(jnp.float32)
           + params["pos_emb"][jnp.arange(S)][None, :, :]
           + params["type_emb"][langs_tensor])
    h = layernorm(emb.reshape(B * S, D), params["emb_ln_g"], params["emb_ln_b"])

    # [B, 1, S] additive key mask (1 = keep, 0 = pad); broadcast over heads
    # inside the attention kernel — no per-head repeat in HBM.
    add_mask = ((1.0 - pads.astype(jnp.float32)) * MASK_VALUE)[:, None, :]

    for lyr in params["layers"]:
        qkv = dense(h, lyr["w_qkv"], lyr["b_qkv"])            # [B*S, 3D]
        q, k, v = qkv[:, :D], qkv[:, D:2 * D], qkv[:, 2 * D:]
        ctx = flash_attention(q, k, v, add_mask,
                              batch=B, seq=S, num_heads=num_heads)
        # attention output projection fused with residual-add + LayerNorm
        h = dense_ln(ctx, lyr["wo"], lyr["bo"],
                     lyr["ln1_g"], lyr["ln1_b"], residual=h)
        inter = dense(h, lyr["wi"], lyr["bi"], activation="gelu")
        # FFN output projection fused with residual-add + LayerNorm
        h = dense_ln(inter, lyr["wo2"], lyr["bo2"],
                     lyr["ln2_g"], lyr["ln2_b"], residual=h)

    return h                                                   # [B*S, D]


def lm_forward(params, mask_np, texts, pads, langs, num_heads):
    B, S = texts.shape

    # langs.squeeze().unsqueeze(1).expand(-1, S)
    langs_tensor = jnp.broadcast_to(jnp.squeeze(langs)[:, None], (B, S))

    h = bert_encoder(params, texts, pads, langs_tensor, num_heads)

    # text_hidden[mask]: static masked-position gather (glue), padded up to a
    # multiple of 8 rows so downstream kernels get sublane-dense tiles.
    # TODO(synk): masked-position set is baked in at trace time (not jit-able
    # over dynamic boolean masks).
    flat_idx = np.nonzero(np.asarray(mask_np).reshape(-1))[0]
    n = int(flat_idx.shape[0])
    n_pad = max(8, -(-n // 8) * 8)
    idx = np.zeros((n_pad,), np.int32)
    idx[:n] = flat_idx
    h_masked = h[jnp.asarray(idx)]                             # [n_pad, D]

    # MLM head: dense + GELU + LayerNorm fused in one kernel.
    t = dense_ln(h_masked, params["mlm_w"], params["mlm_b"],
                 params["mlm_ln_g"], params["mlm_ln_b"], activation="gelu")
    # Tied decoder: logits = t @ word_emb.T + bias (no transpose materialized,
    # vocab axis tiled inside the kernel).
    logits = dense_nt(t, params["word_emb"], params["decoder_bias"])

    # F.log_softmax(..., dim=1); drop padding rows.
    return log_softmax(logits)[:n]


# ---------------------------------- Main ------------------------------------

if __name__ == "__main__":
    # Small, module-consistent shapes.
    B, S = 2, 8
    VOCAB, DIM, INTER = 64, 32, 64
    N_LAYERS, N_HEADS, N_TYPES, MAX_POS = 2, 4, 2, 64

    key = jax.random.PRNGKey(0)
    kp, kt = jax.random.split(key)

    params = init_params(kp, VOCAB, DIM, INTER, N_LAYERS, N_TYPES, MAX_POS)

    texts = jax.random.randint(kt, (B, S), 0, VOCAB, dtype=jnp.int32)
    pads = jnp.array([[1] * S, [1] * (S - 2) + [0, 0]], dtype=jnp.int32)
    langs = jnp.array([[0], [1]], dtype=jnp.int32)             # [B, 1]

    # Deterministic MLM mask: 4 masked positions per sequence (N = 8 total).
    mask_np = np.zeros((B, S), dtype=bool)
    mask_np[:, 1:5] = True

    out = lm_forward(params, mask_np, texts, pads, langs, N_HEADS)
    out = jax.block_until_ready(out)

    n_masked = int(mask_np.sum())
    assert out.shape == (n_masked, VOCAB), out.shape
    # Rows of log_softmax must (log-)sum to ~0.
    assert np.allclose(np.exp(np.asarray(out)).sum(axis=1), 1.0, atol=1e-4)

    print("KERNEL_OK")
</pallas_src>

<mosaic_0001>
module attributes {stable_mosaic.version = 11 : i64} {
  func.func @_layernorm_kernel(%arg0: i32, %arg1: memref<16x32xf32, #tpu.memory_space<vmem>>, %arg2: memref<1x32xf32, #tpu.memory_space<vmem>>, %arg3: memref<1x32xf32, #tpu.memory_space<vmem>>, %arg4: memref<16x32xf32, #tpu.memory_space<vmem>>) attributes {dimension_semantics = [#tpu.dimension_semantics<parallel>], iteration_bounds = array<i64: 1>, scalar_prefetch = 0 : i64, scratch_operands = 0 : i64, tpu.core_type = #tpu.core_type<tc>, window_params = [{transform_indices = @transform_0, window_bounds = array<i64: 16, 32>}, {pipeline_mode = #tpu.pipeline_mode<synchronous>, transform_indices = @transform_1, window_bounds = array<i64: 1, 32>}, {pipeline_mode = #tpu.pipeline_mode<synchronous>, transform_indices = @transform_2, window_bounds = array<i64: 1, 32>}, {transform_indices = @transform_3, window_bounds = array<i64: 16, 32>}]} {
    %c0 = arith.constant 0 : index
    %c0_0 = arith.constant 0 : index
    %0 = vector.load %arg1[%c0, %c0_0] : memref<16x32xf32, #tpu.memory_space<vmem>>, vector<16x32xf32>
    %cst = arith.constant dense<0.000000e+00> : vector<16xf32>
    %1 = vector.multi_reduction <add>, %0, %cst [1] : vector<16x32xf32> to vector<16xf32>
    %2 = vector.shape_cast %1 : vector<16xf32> to vector<16x1xf32>
    %cst_1 = arith.constant 3.200000e+01 : f32
    %3 = vector.broadcast %cst_1 : f32 to vector<16x1xf32>
    %4 = arith.divf %2, %3 : vector<16x1xf32>
    %5 = vector.broadcast %4 : vector<16x1xf32> to vector<16x32xf32>
    %6 = arith.subf %0, %5 : vector<16x32xf32>
    %7 = arith.mulf %6, %6 : vector<16x32xf32>
    %cst_2 = arith.constant dense<0.000000e+00> : vector<16xf32>
    %8 = vector.multi_reduction <add>, %7, %cst_2 [1] : vector<16x32xf32> to vector<16xf32>
    %9 = vector.shape_cast %8 : vector<16xf32> to vector<16x1xf32>
    %cst_3 = arith.constant 3.200000e+01 : f32
    %10 = vector.broadcast %cst_3 : f32 to vector<16x1xf32>
    %11 = arith.divf %9, %10 : vector<16x1xf32>
    %12 = vector.broadcast %4 : vector<16x1xf32> to vector<16x32xf32>
    %13 = arith.subf %0, %12 : vector<16x32xf32>
    %cst_4 = arith.constant 9.99999996E-13 : f32
    %14 = vector.broadcast %cst_4 : f32 to vector<16x1xf32>
    %15 = arith.addf %11, %14 : vector<16x1xf32>
    %16 = math.rsqrt %15 : vector<16x1xf32>
    %17 = vector.broadcast %16 : vector<16x1xf32> to vector<16x32xf32>
    %18 = arith.mulf %13, %17 : vector<16x32xf32>
    %c0_5 = arith.constant 0 : index
    %c0_6 = arith.constant 0 : index
    %19 = vector.load %arg2[%c0_5, %c0_6] : memref<1x32xf32, #tpu.memory_space<vmem>>, vector<1x32xf32>
    %20 = vector.broadcast %19 : vector<1x32xf32> to vector<16x32xf32>
    %21 = arith.mulf %18, %20 : vector<16x32xf32>
    %c0_7 = arith.constant 0 : index
    %c0_8 = arith.constant 0 : index
    %22 = vector.load %arg3[%c0_7, %c0_8] : memref<1x32xf32, #tpu.memory_space<vmem>>, vector<1x32xf32>
    %23 = vector.broadcast %22 : vector<1x32xf32> to vector<16x32xf32>
    %24 = arith.addf %21, %23 : vector<16x32xf32>
    %c0_9 = arith.constant 0 : index
    %c0_10 = arith.constant 0 : index
    %25 = vector.load %arg4[%c0_9, %c0_10] : memref<16x32xf32, #tpu.memory_space<vmem>>, vector<16x32xf32>
    tpu.vector_store %arg4[%c0_9, %c0_10], %24 {strides = array<i32>} : memref<16x32xf32, #tpu.memory_space<vmem>>, vector<16x32xf32>,
    return
  }
  func.func @transform_0(%arg0: i32) -> (i32, i32) {
    %c0_i32 = arith.constant 0 : i32
    %c0_i32_0 = arith.constant 0 : i32
    return %arg0, %c0_i32 : i32, i32
  }
  func.func @transform_1(%arg0: i32) -> (i32, i32) {
    %c0_i32 = arith.constant 0 : i32
    %c0_i32_0 = arith.constant 0 : i32
    %c0_i32_1 = arith.constant 0 : i32
    return %c0_i32, %c0_i32_0 : i32, i32
  }
  func.func @transform_2(%arg0: i32) -> (i32, i32) {
    %c0_i32 = arith.constant 0 : i32
    %c0_i32_0 = arith.constant 0 : i32
    %c0_i32_1 = arith.constant 0 : i32
    return %c0_i32, %c0_i32_0 : i32, i32
  }
  func.func @transform_3(%arg0: i32) -> (i32, i32) {
    %c0_i32 = arith.constant 0 : i32
    %c0_i32_0 = arith.constant 0 : i32
    return %arg0, %c0_i32 : i32, i32
  }
}

</mosaic_0001>

<bundles_post_ra>
// kernel: tpu_custom_call.1
= control target key start
LH: loop header
LB: loop body
LE: loop exit
PB: predicated region body
PF: predicated region fallthrough
CT: control target
= control target key end

     0   :  { %8 = vsyncpa [#allocation3], 0  ;;  %s220_s0 = inlined_call_operand.hbm [shape: f32[16,32], index: 0, kind: input, shape index: {}]   ;;  %s221_s1 = inlined_call_operand.vmem [shape: f32[1,32], index: 1, kind: input, shape index: {}]   ;;  %s222_s2 = inlined_call_operand.vmem [shape: f32[1,32], index: 2, kind: input, shape index: {}]   ;;  %s223_s3 = inlined_call_operand.hbm [shape: f32[16,32], index: 3, kind: output, shape index: {}]  }
   0x1   :  { %9 = vsyncpa [#allocation4], 0  ;;  %s154_s12 = smov [#allocation2]   ;;  %s106_s16 = scalar_lea.hbm %s220_s0, 256 }
   0x2   :  { %s15_s13 = sshll.u32 %s154_s12, 4  ;;  %p107_p0 = scmp.ne.s32.totalorder %s220_s0, %s106_s16  ;;  %s16_s13 = int_to_ptr.vmem [resolvable:$true] %s15_s13 }
   0x3   :  { %p110_p1 = scmp.lt.u32.totalorder %s106_s16, %s220_s0 }
   0x5   :  { %p112_p2 = pnand %p110_p1, %p107_p0 }
   0x7   :  { %115 = shalt.err (!%p112_p2)
}
   0x8   :  { %s116_s21 = scalar_lea.vmem %s16_s13, 256  ;;  %p121_p4 = scmp.lt.s32.totalorder %s16_s13, %s16_s13 }
   0x9   :  { %p117_p3 = scmp.ne.s32.totalorder %s16_s13, %s116_s21  ;;  %p122_p5 = scmp.lt.s32.totalorder %s116_s21, %s116_s21 }
   0xb   :  { %p123_p6 = por %p122_p5, %p121_p4 }
   0xd   :  { %p124_p7 = pnand %p123_p6, %p117_p3 }
   0xf   :  { %127 = shalt.err (!%p124_p7)
}
  0x10   :  { %s155_s22 = smov 128   ;;  %s156_s23 = smov 8  }
  0x11   :  { %21 = dma.hbm_to_vmem [thread:$0]  %s220_s0, 256, %s16_s13, [#allocation3], %s155_s22, %s155_s22, %s156_s23  }
  0x12   :  { %150 = dma.done.wait [#allocation3], 256  }
  0x13   :  { %151 = vsyncadd [#allocation3], 4294967040  ;;  %vm31_vm0 = vcmask 261120   ;;  %v29_v0 = vld [vmem:[#allocation2] sm:$0xff]  ;;  %v30_v1 = vld [vmem:[#allocation2 + $0x8] sm:$0xff]  ;;  %s157_s29 = smov [#allocation5]  }
  0x14   :  { %v32_v2 = vsel %vm31_vm0, %v29_v0, 0.0  ;;  %v35_v3 = vsel %vm31_vm0, %v30_v1, 0.0  ;;  %v96_v21 = vld [vmem:[%s221_s1] ss:$0 sm:$0xff]  ;;  %s84_s30 = sshll.u32 %s157_s29, 4  ;;  %s85_s30 = int_to_ptr.vmem [resolvable:$true] %s84_s30 }
  0x15   :  { %33 = vadd.xlane.f32.xlu0 %v32_v2  ;;  %v97_v23 = vld [vmem:[%s222_s2] ss:$0 sm:$0xff]  ;;  %s128_s4 = scalar_lea.vmem %s85_s30, 256  ;;  %p133_p9 = scmp.lt.s32.totalorder %s85_s30, %s85_s30 }
  0x16   :  { %p129_p8 = scmp.ne.s32.totalorder %s85_s30, %s128_s4  ;;  %p134_p10 = scmp.lt.s32.totalorder %s128_s4, %s128_s4 }
  0x18   :  { %p135_p11 = por %p134_p10, %p133_p9 }
  0x19   :  { %36 = vadd.xlane.f32.xlu0 %v35_v3 }
  0x1a   :  { %p136_p12 = pnand %p135_p11, %p129_p8 }
  0xa2   :  { %v34_v4 = vpop.xlane.xlu0 %33 }
  0xa3   :  { %v39_v5 = vmul.f32 0.03125, %v34_v4 }
  0xa5   :  { %v41_v6 = vsub.f32 %v29_v0, %v39_v5 }
  0xa6   :  { %v37_v7 = vpop.xlane.xlu0 %36 }
  0xa7   :  { %v40_v8 = vmul.f32 0.03125, %v37_v7  ;;  %v43_v9 = vmul.f32 %v41_v6, %v41_v6 }
  0xa9   :  { %v42_v10 = vsub.f32 %v30_v1, %v40_v8  ;;  %v45_v11 = vsel %vm31_vm0, %v43_v9, 0.0 }
  0xaa   :  { %46 = vadd.xlane.f32.xlu1 %v45_v11 }
  0xab   :  { %v44_v12 = vmul.f32 %v42_v10, %v42_v10 }
  0xad   :  { %v48_v13 = vsel %vm31_vm0, %v44_v12, 0.0 }
  0xae   :  { %49 = vadd.xlane.f32.xlu1 %v48_v13 }
 0x137   :  { %v47_v14 = vpop.xlane.xlu1 %46 }
 0x138   :  { %v51_v15 = vmul.f32 0.03125, %v47_v14 }
 0x13a   :  { %v53_v16 = vadd.f32 1e-12, %v51_v15 }
 0x13b   :  { %v50_v17 = vpop.xlane.xlu1 %49 }
 0x13c   :  { %102 = vrsqrt.f32 %v53_v16  ;;  %v52_v18 = vmul.f32 0.03125, %v50_v17 }
 0x13e   :  { %v54_v19 = vadd.f32 1e-12, %v52_v18 }
 0x140   :  { %104 = vrsqrt.f32 %v54_v19 }
 0x146   :  { %v103_v20 = vpop.eup %102 }
 0x147   :  { %v57_v22 = vmul.f32 %v103_v20, %v41_v6 }
 0x149   :  { %v66_v24 = vmul.f32 %v96_v21, %v57_v22 }
 0x14a   :  { %v105_v25 = vpop.eup %104 }
 0x14b   :  { %v58_v26 = vmul.f32 %v105_v25, %v42_v10  ;;  %v75_v27 = vadd.f32 %v97_v23, %v66_v24 }
 0x14d   :  { %v67_v28 = vmul.f32 %v96_v21, %v58_v26  ;;  %77 = vst.msk [vmem:[#allocation5] sm:$0xff] %vm31_vm0, %v75_v27 }
 0x14f   :  { %v76_v29 = vadd.f32 %v97_v23, %v67_v28 }
 0x151   :  { %78 = vst.msk [vmem:[#allocation5 + $0x8] sm:$0xff] %vm31_vm0, %v76_v29 }
 0x152   :  { %139 = shalt.err (!%p136_p12)
}
 0x153   :  { %s140_s5 = scalar_lea.hbm %s223_s3, 256 }
 0x154   :  { %p141_p13 = scmp.ne.s32.totalorder %s223_s3, %s140_s5  ;;  %p144_p0 = scmp.lt.u32.totalorder %s140_s5, %s223_s3 }
 0x156   :  { %p146_p1 = pnand %p144_p0, %p141_p13 }
 0x158   :  { %149 = shalt.err (!%p146_p1)
}
 0x159   :  { %90 = dma.vmem_to_hbm [thread:$0]  %s85_s30, 256, %s223_s3, [#allocation4], %s155_s22, %s155_s22, %s156_s23  }
 0x15a   :  { %152 = dma.done.wait [#allocation4], 256  }
 0x15b   :  { %153 = vsyncadd [#allocation4], 4294967040 }
 0x15c   :  { %94 = vsyncpa [#allocation3], 1 }
 0x15d   :  { %95 = vsyncpa [#allocation4], 1 }

</bundles_post_ra>
